<compile_context>
chip_gen: v7x
topology: tpu7x:2x2x1
jax: 0.10.0
libtpu: 0.0.40
codegen_flags: <defaults>
</compile_context>

<pallas_src>
import jax
import jax.numpy as jnp
import numpy as np
from jax.experimental import pallas as pl
from jax.experimental.pallas import tpu as pltpu

HIDDEN = 128


def policy_net_kernel(x_ref, w_ref, b_ref, f_ref, out_ref):
    # Single fused MXU matmul over the concatenated K axis (E + 2B), f32 accumulation.
    h = jnp.dot(x_ref[...], w_ref[...], preferred_element_type=jnp.float32) + b_ref[...]
    h = jnp.maximum(h, 0.0)                                   # relu

    # Both heads in one MXU contraction: (B, 128) @ (128, 2) -> (B, 2).
    heads = jnp.dot(h, f_ref[...], preferred_element_type=jnp.float32)

    # Stable softplus over both heads at once, then per-head mean over the batch.
    sp = jnp.logaddexp(0.0, heads)                            # (B, 2)
    out_ref[...] = jnp.mean(sp, axis=0, keepdims=True) + 50.0  # (1, 2) = [alpha, beta]


def policy_net_forward(x1, x2, x3, params):
    """Returns (alpha, beta) as f32 scalars."""
    W1, W2, W3, b, fc_alpha, fc_beta = params

    # Wrapper-side operand fusion (layout plumbing, not compute hoisting):
    x = jnp.concatenate([x1, x2, x3], axis=1)          # (B, E + 2B)
    w = jnp.concatenate([W1, W2, W3], axis=0)          # (E + 2B, 128)
    f = jnp.concatenate([fc_alpha, fc_beta], axis=1)   # (128, 2)

    vmem = pl.BlockSpec(memory_space=pltpu.MemorySpace.VMEM)

    out = pl.pallas_call(
        policy_net_kernel,
        out_shape=jax.ShapeDtypeStruct((1, 2), jnp.float32),
        in_specs=[vmem, vmem, vmem, vmem],
        out_specs=pl.BlockSpec(memory_space=pltpu.MemorySpace.VMEM),
    )(x, w, b, f)
    return out[0, 0], out[0, 1]


def init_params(key, num_teacher, embedding_length, batch_size):
    # Deterministic uniform(-0.5, 0.5) init, matching the PyTorch __init__ shapes.
    ks = jax.random.split(key, 6)
    u = lambda k, shape: jax.random.uniform(k, shape, jnp.float32, -0.5, 0.5)
    W1 = u(ks[0], (embedding_length, HIDDEN))
    W2 = u(ks[1], (batch_size, HIDDEN))
    W3 = u(ks[2], (batch_size, HIDDEN))
    b = u(ks[3], (1, HIDDEN))
    fc_alpha = u(ks[4], (HIDDEN, 1))
    fc_beta = u(ks[5], (HIDDEN, 1))
    return (W1, W2, W3, b, fc_alpha, fc_beta)


def reference_forward(x1, x2, x3, params):
    W1, W2, W3, b, fc_alpha, fc_beta = params
    h = jax.nn.relu(x1 @ W1 + x2 @ W2 + x3 @ W3 + b)
    alpha = jax.nn.softplus(h @ fc_alpha).mean() + 50.0
    beta = jax.nn.softplus(h @ fc_beta).mean() + 50.0
    return alpha, beta


if __name__ == "__main__":
    # Small shapes consistent with the module: x1:(B,E), x2:(B,B), x3:(B,B)
    batch_size = 8
    embedding_length = 32
    num_teacher = 2

    key = jax.random.PRNGKey(0)
    k_params, k1, k2, k3 = jax.random.split(key, 4)

    params = init_params(k_params, num_teacher, embedding_length, batch_size)
    x1 = jax.random.normal(k1, (batch_size, embedding_length), jnp.float32)
    x2 = jax.random.normal(k2, (batch_size, batch_size), jnp.float32)
    x3 = jax.random.normal(k3, (batch_size, batch_size), jnp.float32)

    alpha, beta = policy_net_forward(x1, x2, x3, params)
    jax.block_until_ready((alpha, beta))

    ref_alpha, ref_beta = reference_forward(x1, x2, x3, params)
    np.testing.assert_allclose(np.asarray(alpha), np.asarray(ref_alpha),
                               rtol=1e-5, atol=1e-5)
    np.testing.assert_allclose(np.asarray(beta), np.asarray(ref_beta),
                               rtol=1e-5, atol=1e-5)

    # TODO(synk): take_action/test_policy (Beta/Bernoulli sampling, epsilon decay)
    # are host-side control logic, not part of the forward kernel.
    print("KERNEL_OK")
</pallas_src>

<mosaic_0001>
module attributes {stable_mosaic.version = 11 : i64} {
  func.func @policy_net_kernel(%arg0: memref<8x48xf32, #tpu.memory_space<vmem>>, %arg1: memref<48x128xf32, #tpu.memory_space<vmem>>, %arg2: memref<1x128xf32, #tpu.memory_space<vmem>>, %arg3: memref<128x2xf32, #tpu.memory_space<vmem>>, %arg4: memref<1x2xf32, #tpu.memory_space<vmem>>) attributes {dimension_semantics = [], scalar_prefetch = 0 : i64, scratch_operands = 0 : i64, tpu.core_type = #tpu.core_type<tc>} {
    %c0 = arith.constant 0 : index
    %c0_0 = arith.constant 0 : index
    %0 = vector.load %arg0[%c0, %c0_0] : memref<8x48xf32, #tpu.memory_space<vmem>>, vector<8x48xf32>
    %c0_1 = arith.constant 0 : index
    %c0_2 = arith.constant 0 : index
    %1 = vector.load %arg1[%c0_1, %c0_2] : memref<48x128xf32, #tpu.memory_space<vmem>>, vector<48x128xf32>
    %cst = arith.constant dense<0.000000e+00> : vector<8x128xf32>
    %2 = tpu.matmul %0, %1, %cst {dimension_numbers = #tpu.dot_dimension_numbers<[1], [0], [0], [1], [0, 0, 1, 1], [], []>} : vector<8x48xf32>, vector<48x128xf32>, vector<8x128xf32> -> vector<8x128xf32>
    %c0_3 = arith.constant 0 : index
    %c0_4 = arith.constant 0 : index
    %3 = vector.load %arg2[%c0_3, %c0_4] : memref<1x128xf32, #tpu.memory_space<vmem>>, vector<1x128xf32>
    %4 = vector.broadcast %3 : vector<1x128xf32> to vector<8x128xf32>
    %5 = arith.addf %2, %4 : vector<8x128xf32>
    %cst_5 = arith.constant 0.000000e+00 : f32
    %6 = vector.broadcast %cst_5 : f32 to vector<8x128xf32>
    %7 = arith.maximumf %5, %6 : vector<8x128xf32>
    %c0_6 = arith.constant 0 : index
    %c0_7 = arith.constant 0 : index
    %8 = vector.load %arg3[%c0_6, %c0_7] : memref<128x2xf32, #tpu.memory_space<vmem>>, vector<128x2xf32>
    %cst_8 = arith.constant dense<0.000000e+00> : vector<8x2xf32>
    %9 = tpu.matmul %7, %8, %cst_8 {dimension_numbers = #tpu.dot_dimension_numbers<[1], [0], [0], [1], [0, 0, 1, 1], [], []>} : vector<8x128xf32>, vector<128x2xf32>, vector<8x2xf32> -> vector<8x2xf32>
    %cst_9 = arith.constant 0.000000e+00 : f32
    %10 = vector.broadcast %cst_9 : f32 to vector<8x2xf32>
    %11 = arith.maximumf %10, %9 : vector<8x2xf32>
    %12 = vector.broadcast %cst_9 : f32 to vector<8x2xf32>
    %13 = arith.subf %12, %9 : vector<8x2xf32>
    %14 = arith.cmpf one, %13, %13 : vector<8x2xf32>
    %15 = vector.broadcast %cst_9 : f32 to vector<8x2xf32>
    %16 = arith.addf %15, %9 : vector<8x2xf32>
    %17 = math.absf %13 : vector<8x2xf32>
    %cst_10 = arith.constant 0.000000e+00 : f32
    %18 = vector.broadcast %cst_10 : f32 to vector<8x2xf32>
    %19 = arith.subf %18, %17 : vector<8x2xf32>
    %20 = math.exp %19 : vector<8x2xf32>
    %21 = math.log1p %20 : vector<8x2xf32>
    %22 = arith.addf %11, %21 : vector<8x2xf32>
    %23 = arith.select %14, %16, %22 : vector<8x2xi1>, vector<8x2xf32>
    %cst_11 = arith.constant dense<0.000000e+00> : vector<2xf32>
    %24 = vector.multi_reduction <add>, %23, %cst_11 [0] : vector<8x2xf32> to vector<2xf32>
    %25 = vector.shape_cast %24 : vector<2xf32> to vector<1x2xf32>
    %cst_12 = arith.constant 8.000000e+00 : f32
    %26 = vector.broadcast %cst_12 : f32 to vector<1x2xf32>
    %27 = arith.divf %25, %26 : vector<1x2xf32>
    %cst_13 = arith.constant 5.000000e+01 : f32
    %28 = vector.broadcast %cst_13 : f32 to vector<1x2xf32>
    %29 = arith.addf %27, %28 : vector<1x2xf32>
    %c0_14 = arith.constant 0 : index
    %c0_15 = arith.constant 0 : index
    %30 = vector.load %arg4[%c0_14, %c0_15] : memref<1x2xf32, #tpu.memory_space<vmem>>, vector<1x2xf32>
    tpu.vector_store %arg4[%c0_14, %c0_15], %29 {strides = array<i32>} : memref<1x2xf32, #tpu.memory_space<vmem>>, vector<1x2xf32>,
    return
  }
}

</mosaic_0001>

<bundles_post_ra>
// kernel: tpu_custom_call.1
= control target key start
LH: loop header
LB: loop body
LE: loop exit
PB: predicated region body
PF: predicated region fallthrough
CT: control target
= control target key end

     0   :  { %v380_v3 = vmov 0.0|0.0   ;;  %vm381_vm0 = vmmov 0   ;;  %v382_v6 = vmov 0.0   ;;  %s493_s0 = inlined_call_operand.vmem [shape: f32[8,48], index: 0, kind: input, shape index: {}]   ;;  %s494_s1 = inlined_call_operand.vmem [shape: f32[48,128], index: 1, kind: input, shape index: {}]   ;;  %s495_s2 = inlined_call_operand.vmem [shape: f32[1,128], index: 2, kind: input, shape index: {}]   ;;  %s496_s3 = inlined_call_operand.vmem [shape: f32[128,2], index: 3, kind: input, shape index: {}]   ;;  %s497_s4 = inlined_call_operand.hbm [shape: f32[1,2], index: 4, kind: output, shape index: {}]  }
   0x1   :  { %v19_v0 = vld [vmem:[%s494_s1] sm:$0xff]  ;;  %v20_v1 = vld [vmem:[%s494_s1 + $0x8] sm:$0xff]  ;;  %v21_v2 = vld [vmem:[%s494_s1 + $0x10] sm:$0xff]  ;;  %315 = vmatprep.subr.bf16.mxu0 %v380_v3  ;;  %277 = vmatprep.mubr.msk.f32.mxu0 %vm381_vm0, %v382_v6 }
   0x2   :  { %v316_v4 = vpack.c.bf16 %v20_v1, %v19_v0  ;;  %v22_v5 = vld [vmem:[%s494_s1 + $0x18] sm:$0xff]  ;;  %324 = vmatprep.subr.bf16.mxu1 %v380_v3  ;;  %v107_v7 = vld [vmem:[%s496_s3] sm:$0xff]  ;;  %v108_v8 = vld [vmem:[%s496_s3 + $0x8] sm:$0xff]  ;;  %312 = vmatprep.mubr.msk.f32.mxu1 %vm381_vm0, %v382_v6 }
   0x3   :  { %v319_v9 = vpack.c.bf16 %v22_v5, %v21_v2  ;;  %v325_v10 = vpack.c.bf16 %v108_v8, %v107_v7  ;;  %v109_v11 = vld [vmem:[%s496_s3 + $0x10] sm:$0xff]  ;;  %v110_v12 = vld [vmem:[%s496_s3 + $0x18] sm:$0xff]  ;;  %v23_v13 = vld [vmem:[%s494_s1 + $0x20] sm:$0xff] }
   0x4   :  { %317 = vmatpush3.bf16.msra.mxu0 %v316_v4  ;;  %v24_v14 = vld [vmem:[%s494_s1 + $0x28] sm:$0xff]  ;;  %v328_v15 = vpack.c.bf16 %v110_v12, %v109_v11  ;;  %v111_v16 = vld [vmem:[%s496_s3 + $0x20] sm:$0xff] }
   0x5   :  { %318 = vmatprep.subr.bf16.mxu0 %v380_v3  ;;  %326 = vmatpush3.bf16.msra.mxu1 %v325_v10  ;;  %v112_v17 = vld [vmem:[%s496_s3 + $0x28] sm:$0xff]  ;;  %v322_v18 = vpack.c.bf16 %v24_v14, %v23_v13 }
   0x6   :  { %327 = vmatprep.subr.bf16.mxu1 %v380_v3 }
   0x8   :  { %320 = vmatpush3.bf16.msra.mxu0 %v319_v9 }
   0x9   :  { %9 = vsyncpa [#allocation3], 0  ;;  %321 = vmatprep.subr.bf16.mxu0 %v380_v3  ;;  %329 = vmatpush3.bf16.msra.mxu1 %v328_v15  ;;  %v331_v19 = vpack.c.bf16 %v112_v17, %v111_v16  ;;  %v113_v20 = vld [vmem:[%s496_s3 + $0x30] sm:$0xff]  ;;  %v114_v21 = vld [vmem:[%s496_s3 + $0x38] sm:$0xff]  ;;  %vm32_vm1 = vcmask 392192   ;;  %vm212_vm3 = vcmask 15360  }
   0xa   :  { %330 = vmatprep.subr.bf16.mxu1 %v380_v3  ;;  %v18_v22 = vld [vmem:[%s493_s0] sm:$0xff]  ;;  %v334_v23 = vpack.c.bf16 %v114_v21, %v113_v20  ;;  %v116_v25 = vld [vmem:[%s496_s3 + $0x48] sm:$0xff]  ;;  %v117_v27 = vld [vmem:[%s496_s3 + $0x50] sm:$0xff]  ;;  %vm223_vm5 = vcmask 8192  }
   0xb   :  { %v115_v24 = vld [vmem:[%s496_s3 + $0x40] sm:$0xff]  ;;  %v118_v28 = vld [vmem:[%s496_s3 + $0x58] sm:$0xff]  ;;  %v120_v31 = vld [vmem:[%s496_s3 + $0x68] sm:$0xff] }
   0xc   :  { %323 = vmatpush3.bf16.msra.mxu0 %v322_v18  ;;  %v337_v26 = vpack.c.bf16 %v116_v25, %v115_v24  ;;  %v340_v29 = vpack.c.bf16 %v118_v28, %v117_v27  ;;  %v119_v30 = vld [vmem:[%s496_s3 + $0x60] sm:$0xff]  ;;  %v121_v33 = vld [vmem:[%s496_s3 + $0x70] sm:$0xff]  ;;  %v122_v34 = vld [vmem:[%s496_s3 + $0x78] sm:$0xff] }
   0xd   :  { %332 = vmatpush3.bf16.msra.mxu1 %v331_v19  ;;  %v343_v32 = vpack.c.bf16 %v120_v31, %v119_v30  ;;  %v346_v35 = vpack.c.bf16 %v122_v34, %v121_v33  ;;  %v239_v36 = vld [vmem:[%s495_s2] ss:$0 sm:$0xff]  ;;  %s383_s2 = smov [#allocation2]  }
   0xe   :  { %333 = vmatprep.subr.bf16.mxu1 %v380_v3  ;;  %s231_s3 = sshll.u32 %s383_s2, 4  ;;  %s232_s3 = int_to_ptr.vmem [resolvable:$true] %s231_s3 }
   0xf   :  { %278 = vmatmul.mubr.msk.f32.vlgmr.msra.gmra.mrb[0].mxu0 %vm32_vm1, %v18_v22  ;;  %s356_s9 = scalar_lea.vmem %s232_s3, 16  ;;  %s360_s10 = scalar_lea.vmem %s232_s3, 32 }
  0x10   :  { %p357_p0 = scmp.ne.s32.totalorder %s232_s3, %s356_s9  ;;  %p361_p1 = scmp.lt.s32.totalorder %s232_s3, %s232_s3 }
  0x11   :  { %335 = vmatpush3.bf16.msra.mxu1 %v334_v23  ;;  %p362_p2 = scmp.lt.s32.totalorder %s360_s10, %s356_s9 }
  0x12   :  { %336 = vmatprep.subr.bf16.mxu1 %v380_v3 }
  0x13   :  { %p363_p3 = por %p362_p2, %p361_p1 }
  0x15   :  { %338 = vmatpush3.bf16.msra.mxu1 %v337_v26  ;;  %p364_p4 = pnand %p363_p3, %p357_p0 }
  0x16   :  { %339 = vmatprep.subr.bf16.mxu1 %v380_v3 }
  0x19   :  { %341 = vmatpush3.bf16.msra.mxu1 %v340_v29 }
  0x1a   :  { %342 = vmatprep.subr.bf16.mxu1 %v380_v3 }
  0x1d   :  { %344 = vmatpush3.bf16.msra.mxu1 %v343_v32 }
  0x1e   :  { %345 = vmatprep.subr.bf16.mxu1 %v380_v3 }
  0x21   :  { %347 = vmatpush3.bf16.msra.mxu1 %v346_v35 }
  0xe2   :  { %v102_v37 = vpop.f32.mrb[0].mxu0 }
  0xe3   :  { %v103_v38 = vadd.f32 %v239_v36, %v102_v37  ;;  %v279_v39 = vpop.f32.mrb[1].mxu0 }
  0xe5   :  { %v106_v40 = vmax.f32 %v103_v38, 0.0 }
  0xe7   :  { %313 = vmatmul.mubr.f32.vlgmr.msra.gmra.mrb[0].mxu1 %v106_v40 }
 0x1ba   :  { %v189_v41 = vpop.f32.mrb[0].mxu1 }
 0x1bb   :  { %v194_v42 = vsub.f32 0.0, %v189_v41  ;;  %v314_v43 = vpop.f32.mrb[1].mxu1  ;;  %v193_v55 = vmax.f32 %v189_v41, 0.0 }
 0x1bd   :  { %v197_v44 = vand.u32 2147483647, %v194_v42  ;;  %vm195_vm4 = vcmp.ne.f32.partialorder %v194_v42, %v194_v42 }
 0x1bf   :  { %v198_v45 = vsub.f32 0.0, %v197_v44 }
 0x1c1   :  { %v199_v46 = vmul.f32 1.442695, %v198_v45 }
 0x1c3   :  { %352 = vpow2.f32 %v199_v46 }
 0x1cd   :  { %v353_v47 = vpop.eup %352 }
 0x1ce   :  { %v201_v48 = vadd.f32 1.0, %v353_v47  ;;  %v204_v49 = vmul.f32 -0.5, %v353_v47  ;;  %v207_v51 = vand.u32 2147483647, %v353_v47 }
 0x1d0   :  { %354 = vlog2.f32 %v201_v48  ;;  %v205_v50 = vadd.f32 1.0, %v204_v49  ;;  %vm208_vm2 = vcmp.lt.f32.partialorder %v207_v51, 0.0004427343 }
 0x1d2   :  { %v206_v54 = vmul.f32 %v353_v47, %v205_v50 }
 0x1da   :  { %v355_v52 = vpop.eup %354 }
 0x1db   :  { %v203_v53 = vmul.f32 0.6931472, %v355_v52 }
 0x1dd   :  { %v209_v56 = vsel %vm208_vm2, %v206_v54, %v203_v53 }
 0x1de   :  { %v210_v57 = vadd.f32 %v209_v56, %v193_v55 }
 0x1e0   :  { %v211_v58 = vsel %vm195_vm4, %v189_v41, %v210_v57 }
 0x1e1   :  { %v213_v59 = vsel %vm212_vm3, %v211_v58, 0.0 }
 0x1e2   :  { %v214_v60 = vrot.slane %v213_v59, 4 }
 0x1e4   :  { %v215_v61 = vadd.f32 %v214_v60, %v213_v59 }
 0x1e6   :  { %v216_v62 = vrot.slane %v215_v61, 2 }
 0x1e8   :  { %v217_v63 = vadd.f32 %v216_v62, %v215_v61 }
 0x1ea   :  { %v218_v0 = vrot.slane %v217_v63, 1 }
 0x1ec   :  { %v219_v1 = vadd.f32 %v218_v0, %v217_v63 }
 0x1ee   :  { %v221_v2 = vmul.f32 0.125, %v219_v1 }
 0x1f0   :  { %v222_v3 = vadd.f32 50.0, %v221_v2 }
 0x1f2   :  { %224 = vst.msk [vmem:[#allocation2] sm:$0x1] %vm223_vm5, %v222_v3 }
 0x1f3   :  { %367 = shalt.err (!%p364_p4)
}
 0x1f4   :  { %s368_s13 = scalar_lea.hbm %s497_s4, 16 }
 0x1f5   :  { %p369_p5 = scmp.ne.s32.totalorder %s497_s4, %s368_s13  ;;  %p372_p6 = scmp.lt.u32.totalorder %s368_s13, %s497_s4 }
 0x1f7   :  { %p374_p7 = pnand %p372_p6, %p369_p5 }
 0x1f9   :  { %377 = shalt.err (!%p374_p7)
}
 0x1fa   :  { %234 = dma.vmem_to_hbm [thread:$0]  %s232_s3, 16, %s497_s4, [#allocation3]  }
 0x1fb   :  { %378 = dma.done.wait [#allocation3], 16  }
 0x1fc   :  { %379 = vsyncadd [#allocation3], 4294967280 }
 0x1fd   :  { %238 = vsyncpa [#allocation3], 1 }

</bundles_post_ra>
